<compile_context>
chip_gen: v7x
topology: tpu7x:2x2x1
jax: 0.10.0
libtpu: 0.0.40
codegen_flags: <defaults>
</compile_context>

<pallas_src>
import jax
import jax.numpy as jnp
from jax.experimental import pallas as pl
from jax.experimental.pallas import tpu as pltpu


def _wavenet_kernel(x_ref, halo_ref, wf_ref, bf_ref, wk_ref, bk_ref, o_ref):
    # x_ref:    (1, C, TL)   input tile (channels on sublanes, time on lanes), f32 or bf16
    # halo_ref: (1, 1, C, 2) neighbour columns: [:, 0] = x[.., tile_start-1], [:, 1] = x[.., tile_end]
    #                        (zeros at the sequence edges == Conv1d zero padding)
    # wf_ref:   (3, 2C, C)   tap-major fused [tanh; sig] conv weights (matmul dtype)
    # bf_ref:   (2C, 1)      fused biases (f32)
    # wk_ref:   (C, C)       1x1 skip-conv weight (matmul dtype)
    # bk_ref:   (C, 1)       1x1 skip-conv bias (f32)
    # o_ref:    (1, C, TL)   output tile (same dtype as x)
    C = o_ref.shape[1]
    TL = o_ref.shape[2]
    mm_dt = wf_ref.dtype

    x_in = x_ref[0, :, :]                       # (C, TL) I/O dtype
    x_c = x_in.astype(mm_dt)                    # matmul copy of the center tap
    halo = halo_ref[0, 0].astype(mm_dt)         # (C, 2)
    left = halo[:, 0:1]                         # (C, 1)
    right = halo[:, 1:2]                        # (C, 1)

    # +-1 shifts along the lane (time) axis: XLU roll + 1-column edge fix from the halo.
    # The lane iota is built once and reused for both edge fixes.
    lane = jax.lax.broadcasted_iota(jnp.int32, (C, TL), 1)
    x_m1 = jnp.where(lane == 0, left, pltpu.roll(x_c, 1, 1))             # x[t-1]
    x_p1 = jnp.where(lane == TL - 1, right, pltpu.roll(x_c, TL - 1, 1))  # x[t+1]

    # Both gated branches via three accumulated (2C, C) @ (C, TL) MXU matmuls
    # (no (3C, TL) im2col temporary, no sublane concat). f32 accumulation.
    y = jnp.dot(wf_ref[1], x_c, preferred_element_type=jnp.float32)
    y = y + jnp.dot(wf_ref[0], x_m1, preferred_element_type=jnp.float32)
    y = y + jnp.dot(wf_ref[2], x_p1, preferred_element_type=jnp.float32)
    y = y + bf_ref[...]

    # Gating in f32 (v5e has no bf16 VPU/EUP); sigmoid via tanh identity -> one EUP op per branch.
    gated = jnp.tanh(y[:C, :]) * (0.5 * (1.0 + jnp.tanh(0.5 * y[C:, :])))

    z = jnp.dot(wk_ref[...], gated.astype(wk_ref.dtype),
                preferred_element_type=jnp.float32) + bk_ref[...]
    o_ref[0, :, :] = (z + x_in.astype(jnp.float32)).astype(o_ref.dtype)


def prepare_wavenet_params(params, matmul_dtype=jnp.bfloat16):
    """One-time preprocessing of torch-layout Conv1d params into the fused kernel layout.

    Torch layout: w_* are (C_out, C_in, K). Output layout is tap-major so the kernel can
    index taps on a leading dim (no lane slicing of the weight inside the kernel)."""
    wt, ws = params["w_tanh"], params["w_sig"]          # (C, C, 3)
    w_fused = jnp.stack(
        [jnp.concatenate([wt[:, :, k], ws[:, :, k]], axis=0) for k in range(3)], axis=0
    )                                                    # (3, 2C, C): tap k pairs with x[t-1+k]
    return {
        "w_fused": w_fused.astype(matmul_dtype),
        "b_fused": jnp.concatenate([params["b_tanh"], params["b_sig"]])
                      .astype(jnp.float32)[:, None],      # (2C, 1)
        "w_skip": params["w_skip"][:, :, 0].astype(matmul_dtype),   # (C, C)
        "b_skip": params["b_skip"].astype(jnp.float32)[:, None],    # (C, 1)
    }


def _round_up(x, m):
    return (x + m - 1) // m * m


def _vmem_capacity_bytes():
    """Per-core VMEM capacity; conservative 64 MiB (v7x) fallback if the query fails."""
    try:
        return int(pltpu.get_tpu_info().vmem_capacity_bytes)
    except Exception:
        return 64 * 1024 * 1024


def _pick_tile(L, C, x_bytes, mm_bytes, tile_budget_bytes, n_batch, max_tl_cap):
    """Largest lane-dense (multiple-of-128) time tile fitting the VMEM budget, with minimal
    right-padding of L and at least 2 grid steps when possible (v7x megacore)."""
    # VMEM bytes per time-column that scale with TL:
    #   in/out tiles (double-buffered) + x_c/x_m1/x_p1 + y (2C rows f32) + gated/z f32 + gated cast
    per_col = C * (4 * x_bytes + 3 * mm_bytes + 2 * 4 + 4 + 4 + mm_bytes)
    max_tl = (tile_budget_bytes // per_col) // 128 * 128
    max_tl = max(128, min(max_tl_cap, max_tl))
    L128 = _round_up(L, 128)
    num_tiles = -(-L128 // max_tl)
    if n_batch * num_tiles < 2 and L128 >= 256:
        num_tiles = 2          # keep both v7x TensorCores busy for short, single-batch inputs
    tl = _round_up(-(-L128 // num_tiles), 128)
    return tl, num_tiles


def wavenet_layer(x_ncl, fused, *, max_tl=4096):
    """x_ncl: [N, C, L] float32 or bfloat16; fused: output of prepare_wavenet_params().
    Returns (out, skip) — identical arrays, matching the torch in-place aliasing."""
    N, C, L = x_ncl.shape
    mm_dtype = fused["w_fused"].dtype
    x_bytes = jnp.dtype(x_ncl.dtype).itemsize
    mm_bytes = jnp.dtype(mm_dtype).itemsize

    # VMEM budget: generation-aware limit (v5e/v6e: up to 100 MiB, v7x/fallback: ~51 MiB),
    # minus resident weights and fixed headroom for Mosaic internal scratch.
    cap = _vmem_capacity_bytes()
    vmem_limit = min((cap * 4) // 5, 100 * 1024 * 1024)
    weight_bytes = (6 * C * C + C * C + 3 * C) * mm_bytes * 2
    tile_budget = max(4 * 1024 * 1024, vmem_limit - weight_bytes - 8 * 1024 * 1024)

    TL, num_tiles = _pick_tile(L, C, x_bytes, mm_bytes, tile_budget, N, max_tl)
    L_pad = TL * num_tiles
    x_p = x_ncl if L_pad == L else jnp.pad(x_ncl, ((0, 0), (0, 0), (0, L_pad - L)))

    # Tiny per-tile halo columns (left neighbour x[.., l*TL-1], right neighbour x[.., (l+1)*TL]);
    # zeros at the sequence edges reproduce Conv1d's zero padding. Right-pad zeros also give the
    # correct zero tap at t = L-1 when L was padded up to L_pad.
    zcol = jnp.zeros((N, C, 1), x_p.dtype)
    if num_tiles > 1:
        left = jnp.concatenate([zcol, x_p[:, :, TL - 1:L_pad - 1:TL]], axis=2)
        right = jnp.concatenate([x_p[:, :, TL::TL], zcol], axis=2)
    else:
        left, right = zcol, zcol
    halo = jnp.transpose(jnp.stack([left, right], axis=-1), (0, 2, 1, 3))  # (N, num_tiles, C, 2)

    out = pl.pallas_call(
        _wavenet_kernel,
        out_shape=jax.ShapeDtypeStruct((N, C, L_pad), x_ncl.dtype),
        grid=(N, num_tiles),
        in_specs=[
            pl.BlockSpec((1, C, TL), lambda n, l: (n, 0, l)),
            pl.BlockSpec((1, 1, C, 2), lambda n, l: (n, l, 0, 0)),
            pl.BlockSpec((3, 2 * C, C), lambda n, l: (0, 0, 0)),   # resident weights
            pl.BlockSpec((2 * C, 1), lambda n, l: (0, 0)),
            pl.BlockSpec((C, C), lambda n, l: (0, 0)),
            pl.BlockSpec((C, 1), lambda n, l: (0, 0)),
        ],
        out_specs=pl.BlockSpec((1, C, TL), lambda n, l: (n, 0, l)),
        input_output_aliases={0: 0},            # out reuses x's HBM buffer (torch in-place add)
        compiler_params=pltpu.CompilerParams(
            dimension_semantics=("parallel", "parallel"),
            vmem_limit_bytes=int(vmem_limit),
        ),
    )(x_p, halo, fused["w_fused"], fused["b_fused"], fused["w_skip"], fused["b_skip"])

    if L_pad != L:
        out = out[:, :, :L]
    return out, out


def _reference(x, params):
    """Pure-JAX reference matching torch Conv1d semantics (NCL layout)."""
    dn = ("NCH", "OIH", "NCH")
    yt = jax.lax.conv_general_dilated(
        x, params["w_tanh"], (1,), ((1, 1),), dimension_numbers=dn
    ) + params["b_tanh"][None, :, None]
    ys = jax.lax.conv_general_dilated(
        x, params["w_sig"], (1,), ((1, 1),), dimension_numbers=dn
    ) + params["b_sig"][None, :, None]
    g = jnp.tanh(yt) * jax.nn.sigmoid(ys)
    z = jax.lax.conv_general_dilated(
        g, params["w_skip"], (1,), ((0, 0),), dimension_numbers=dn
    ) + params["b_skip"][None, :, None]
    out = z + x
    return out, out


def _make_params(key, C):
    kw1, kb1, kw2, kb2, kw3, kb3 = jax.random.split(key, 6)
    return {
        "w_tanh": 0.3 * jax.random.normal(kw1, (C, C, 3), jnp.float32),
        "b_tanh": 0.1 * jax.random.normal(kb1, (C,), jnp.float32),
        "w_sig": 0.3 * jax.random.normal(kw2, (C, C, 3), jnp.float32),
        "b_sig": 0.1 * jax.random.normal(kb2, (C,), jnp.float32),
        "w_skip": 0.3 * jax.random.normal(kw3, (C, C, 1), jnp.float32),
        "b_skip": 0.1 * jax.random.normal(kb3, (C,), jnp.float32),
    }


if __name__ == "__main__":
    # Standard WaveNet keeps channel count constant (in_channels == out_channels == C).
    key = jax.random.PRNGKey(0)
    kx, kp, kx2 = jax.random.split(key, 3)

    N, C, L = 2, 8, 16
    x = jax.random.normal(kx, (N, C, L), jnp.float32)
    params = _make_params(kp, C)
    ref_out, ref_skip = _reference(x, params)

    # 1) Exact-semantics check: f32 I/O, f32 matmul operands (single padded 128-lane tile).
    fused32 = prepare_wavenet_params(params, matmul_dtype=jnp.float32)
    out32, skip32 = jax.block_until_ready(wavenet_layer(x, fused32))
    assert out32.shape == (N, C, L) and skip32.shape == (N, C, L)
    assert jnp.allclose(out32, ref_out, atol=1e-5, rtol=1e-5)
    assert jnp.allclose(skip32, ref_skip, atol=1e-5, rtol=1e-5)

    # 2) Fast path: bf16 activations at the HBM boundary + bf16 MXU operands,
    #    f32 accumulation / gating / residual inside (looser tolerance).
    fused16 = prepare_wavenet_params(params, matmul_dtype=jnp.bfloat16)
    out16, skip16 = jax.block_until_ready(wavenet_layer(x.astype(jnp.bfloat16), fused16))
    assert out16.dtype == jnp.bfloat16
    assert jnp.allclose(out16.astype(jnp.float32), ref_out, atol=1e-1, rtol=5e-2)
    assert jnp.allclose(skip16.astype(jnp.float32), ref_skip, atol=1e-1, rtol=5e-2)

    # 3) Multi-tile path (exercises the inter-tile halo columns and a 2-step grid), f32 exact.
    N2, L2 = 1, 256
    x2 = jax.random.normal(kx2, (N2, C, L2), jnp.float32)
    ref2_out, _ = _reference(x2, params)
    out2, skip2 = jax.block_until_ready(wavenet_layer(x2, fused32, max_tl=128))
    assert out2.shape == (N2, C, L2)
    assert jnp.allclose(out2, ref2_out, atol=1e-5, rtol=1e-5)
    assert jnp.allclose(skip2, ref2_out, atol=1e-5, rtol=1e-5)

    print("KERNEL_OK")
</pallas_src>

<mosaic_0001>
module attributes {stable_mosaic.version = 11 : i64} {
  func.func @_wavenet_kernel(%arg0: i32, %arg1: i32, %arg2: memref<1x8x128xf32, #tpu.memory_space<vmem>>, %arg3: memref<1x1x8x2xf32, #tpu.memory_space<vmem>>, %arg4: memref<3x16x8xf32, #tpu.memory_space<vmem>>, %arg5: memref<16x1xf32, #tpu.memory_space<vmem>>, %arg6: memref<8x8xf32, #tpu.memory_space<vmem>>, %arg7: memref<8x1xf32, #tpu.memory_space<vmem>>, %arg8: memref<1x8x128xf32, #tpu.memory_space<vmem>>) attributes {dimension_semantics = [#tpu.dimension_semantics<parallel>, #tpu.dimension_semantics<parallel>], iteration_bounds = array<i64: 2, 1>, scalar_prefetch = 0 : i64, scratch_operands = 0 : i64, tpu.core_type = #tpu.core_type<tc>, window_params = [{transform_indices = @transform_0, window_bounds = array<i64: 1, 8, 128>}, {transform_indices = @transform_1, window_bounds = array<i64: 1, 1, 8, 2>}, {pipeline_mode = #tpu.pipeline_mode<synchronous>, transform_indices = @transform_2, window_bounds = array<i64: 3, 16, 8>}, {pipeline_mode = #tpu.pipeline_mode<synchronous>, transform_indices = @transform_3, window_bounds = array<i64: 16, 1>}, {pipeline_mode = #tpu.pipeline_mode<synchronous>, transform_indices = @transform_4, window_bounds = array<i64: 8, 8>}, {pipeline_mode = #tpu.pipeline_mode<synchronous>, transform_indices = @transform_5, window_bounds = array<i64: 8, 1>}, {transform_indices = @transform_6, window_bounds = array<i64: 1, 8, 128>}]} {
    %c0 = arith.constant 0 : index
    %c0_0 = arith.constant 0 : index
    %c0_1 = arith.constant 0 : index
    %0 = vector.load %arg2[%c0, %c0_0, %c0_1] : memref<1x8x128xf32, #tpu.memory_space<vmem>>, vector<1x8x128xf32>
    %1 = vector.shape_cast %0 : vector<1x8x128xf32> to vector<8x128xf32>
    %c0_2 = arith.constant 0 : index
    %c0_3 = arith.constant 0 : index
    %c0_4 = arith.constant 0 : index
    %c0_5 = arith.constant 0 : index
    %2 = vector.load %arg3[%c0_2, %c0_3, %c0_4, %c0_5] : memref<1x1x8x2xf32, #tpu.memory_space<vmem>>, vector<1x1x8x2xf32>
    %3 = vector.shape_cast %2 : vector<1x1x8x2xf32> to vector<8x2xf32>
    %4 = vector.extract_strided_slice %3 {offsets = [0, 0], sizes = [8, 1], strides = [1, 1]} : vector<8x2xf32> to vector<8x1xf32>
    %5 = vector.extract_strided_slice %3 {offsets = [0, 1], sizes = [8, 1], strides = [1, 1]} : vector<8x2xf32> to vector<8x1xf32>
    %6 = tpu.iota {dimensions = array<i32: 1>} : vector<8x128xi32>
    %c0_i32 = arith.constant 0 : i32
    %7 = vector.broadcast %c0_i32 : i32 to vector<8x128xi32>
    %8 = arith.cmpi eq, %6, %7 : vector<8x128xi32>
    %c1_i32 = arith.constant 1 : i32
    %9 = tpu.dynamic_rotate %1 by %c1_i32 dim 1 : vector<8x128xf32>, i32 -> vector<8x128xf32>
    %10 = vector.shape_cast %4 : vector<8x1xf32> to vector<8x1xf32>
    %11 = vector.broadcast %10 : vector<8x1xf32> to vector<8x128xf32>
    %12 = arith.select %8, %11, %9 : vector<8x128xi1>, vector<8x128xf32>
    %c127_i32 = arith.constant 127 : i32
    %13 = vector.broadcast %c127_i32 : i32 to vector<8x128xi32>
    %14 = arith.cmpi eq, %6, %13 : vector<8x128xi32>
    %c127_i32_6 = arith.constant 127 : i32
    %15 = tpu.dynamic_rotate %1 by %c127_i32_6 dim 1 : vector<8x128xf32>, i32 -> vector<8x128xf32>
    %16 = vector.shape_cast %5 : vector<8x1xf32> to vector<8x1xf32>
    %17 = vector.broadcast %16 : vector<8x1xf32> to vector<8x128xf32>
    %18 = arith.select %14, %17, %15 : vector<8x128xi1>, vector<8x128xf32>
    %c1 = arith.constant 1 : index
    %c0_7 = arith.constant 0 : index
    %c0_8 = arith.constant 0 : index
    %19 = vector.load %arg4[%c1, %c0_7, %c0_8] : memref<3x16x8xf32, #tpu.memory_space<vmem>>, vector<1x16x8xf32>
    %20 = vector.shape_cast %19 : vector<1x16x8xf32> to vector<16x8xf32>
    %cst = arith.constant dense<0.000000e+00> : vector<16x128xf32>
    %21 = tpu.matmul %20, %1, %cst {dimension_numbers = #tpu.dot_dimension_numbers<[1], [0], [0], [1], [0, 0, 1, 1], [], []>} : vector<16x8xf32>, vector<8x128xf32>, vector<16x128xf32> -> vector<16x128xf32>
    %c0_9 = arith.constant 0 : index
    %c0_10 = arith.constant 0 : index
    %c0_11 = arith.constant 0 : index
    %22 = vector.load %arg4[%c0_9, %c0_10, %c0_11] : memref<3x16x8xf32, #tpu.memory_space<vmem>>, vector<1x16x8xf32>
    %23 = vector.shape_cast %22 : vector<1x16x8xf32> to vector<16x8xf32>
    %cst_12 = arith.constant dense<0.000000e+00> : vector<16x128xf32>
    %24 = tpu.matmul %23, %12, %cst_12 {dimension_numbers = #tpu.dot_dimension_numbers<[1], [0], [0], [1], [0, 0, 1, 1], [], []>} : vector<16x8xf32>, vector<8x128xf32>, vector<16x128xf32> -> vector<16x128xf32>
    %25 = arith.addf %21, %24 : vector<16x128xf32>
    %c2 = arith.constant 2 : index
    %c0_13 = arith.constant 0 : index
    %c0_14 = arith.constant 0 : index
    %26 = vector.load %arg4[%c2, %c0_13, %c0_14] : memref<3x16x8xf32, #tpu.memory_space<vmem>>, vector<1x16x8xf32>
    %27 = vector.shape_cast %26 : vector<1x16x8xf32> to vector<16x8xf32>
    %cst_15 = arith.constant dense<0.000000e+00> : vector<16x128xf32>
    %28 = tpu.matmul %27, %18, %cst_15 {dimension_numbers = #tpu.dot_dimension_numbers<[1], [0], [0], [1], [0, 0, 1, 1], [], []>} : vector<16x8xf32>, vector<8x128xf32>, vector<16x128xf32> -> vector<16x128xf32>
    %29 = arith.addf %25, %28 : vector<16x128xf32>
    %c0_16 = arith.constant 0 : index
    %c0_17 = arith.constant 0 : index
    %30 = vector.load %arg5[%c0_16, %c0_17] : memref<16x1xf32, #tpu.memory_space<vmem>>, vector<16x1xf32>
    %31 = vector.broadcast %30 : vector<16x1xf32> to vector<16x128xf32>
    %32 = arith.addf %29, %31 : vector<16x128xf32>
    %33 = vector.extract_strided_slice %32 {offsets = [0, 0], sizes = [8, 128], strides = [1, 1]} : vector<16x128xf32> to vector<8x128xf32>
    %34 = math.tanh %33 : vector<8x128xf32>
    %35 = vector.extract_strided_slice %32 {offsets = [8, 0], sizes = [8, 128], strides = [1, 1]} : vector<16x128xf32> to vector<8x128xf32>
    %cst_18 = arith.constant 5.000000e-01 : f32
    %36 = vector.broadcast %cst_18 : f32 to vector<8x128xf32>
    %37 = arith.mulf %36, %35 : vector<8x128xf32>
    %38 = math.tanh %37 : vector<8x128xf32>
    %cst_19 = arith.constant 1.000000e+00 : f32
    %39 = vector.broadcast %cst_19 : f32 to vector<8x128xf32>
    %40 = arith.addf %39, %38 : vector<8x128xf32>
    %cst_20 = arith.constant 5.000000e-01 : f32
    %41 = vector.broadcast %cst_20 : f32 to vector<8x128xf32>
    %42 = arith.mulf %41, %40 : vector<8x128xf32>
    %43 = arith.mulf %34, %42 : vector<8x128xf32>
    %c0_21 = arith.constant 0 : index
    %c0_22 = arith.constant 0 : index
    %44 = vector.load %arg6[%c0_21, %c0_22] : memref<8x8xf32, #tpu.memory_space<vmem>>, vector<8x8xf32>
    %cst_23 = arith.constant dense<0.000000e+00> : vector<8x128xf32>
    %45 = tpu.matmul %44, %43, %cst_23 {dimension_numbers = #tpu.dot_dimension_numbers<[1], [0], [0], [1], [0, 0, 1, 1], [], []>} : vector<8x8xf32>, vector<8x128xf32>, vector<8x128xf32> -> vector<8x128xf32>
    %c0_24 = arith.constant 0 : index
    %c0_25 = arith.constant 0 : index
    %46 = vector.load %arg7[%c0_24, %c0_25] : memref<8x1xf32, #tpu.memory_space<vmem>>, vector<8x1xf32>
    %47 = vector.broadcast %46 : vector<8x1xf32> to vector<8x128xf32>
    %48 = arith.addf %45, %47 : vector<8x128xf32>
    %49 = arith.addf %48, %1 : vector<8x128xf32>
    %c0_26 = arith.constant 0 : index
    %c0_27 = arith.constant 0 : index
    %c0_28 = arith.constant 0 : index
    %50 = vector.load %arg8[%c0_26, %c0_27, %c0_28] : memref<1x8x128xf32, #tpu.memory_space<vmem>>, vector<1x8x128xf32>
    %51 = vector.shape_cast %50 : vector<1x8x128xf32> to vector<8x128xf32>
    %52 = vector.shape_cast %49 : vector<8x128xf32> to vector<1x8x128xf32>
    tpu.vector_store %arg8[%c0_26, %c0_27, %c0_28], %52 {strides = array<i32>} : memref<1x8x128xf32, #tpu.memory_space<vmem>>, vector<1x8x128xf32>,
    return
  }
  func.func @transform_0(%arg0: i32, %arg1: i32) -> (i32, i32, i32) {
    %c0_i32 = arith.constant 0 : i32
    %c0_i32_0 = arith.constant 0 : i32
    return %arg0, %c0_i32, %arg1 : i32, i32, i32
  }
  func.func @transform_1(%arg0: i32, %arg1: i32) -> (i32, i32, i32, i32) {
    %c0_i32 = arith.constant 0 : i32
    %c0_i32_0 = arith.constant 0 : i32
    %c0_i32_1 = arith.constant 0 : i32
    return %arg0, %arg1, %c0_i32, %c0_i32_0 : i32, i32, i32, i32
  }
  func.func @transform_2(%arg0: i32, %arg1: i32) -> (i32, i32, i32) {
    %c0_i32 = arith.constant 0 : i32
    %c0_i32_0 = arith.constant 0 : i32
    %c0_i32_1 = arith.constant 0 : i32
    %c0_i32_2 = arith.constant 0 : i32
    return %c0_i32, %c0_i32_0, %c0_i32_1 : i32, i32, i32
  }
  func.func @transform_3(%arg0: i32, %arg1: i32) -> (i32, i32) {
    %c0_i32 = arith.constant 0 : i32
    %c0_i32_0 = arith.constant 0 : i32
    %c0_i32_1 = arith.constant 0 : i32
    return %c0_i32, %c0_i32_0 : i32, i32
  }
  func.func @transform_4(%arg0: i32, %arg1: i32) -> (i32, i32) {
    %c0_i32 = arith.constant 0 : i32
    %c0_i32_0 = arith.constant 0 : i32
    %c0_i32_1 = arith.constant 0 : i32
    return %c0_i32, %c0_i32_0 : i32, i32
  }
  func.func @transform_5(%arg0: i32, %arg1: i32) -> (i32, i32) {
    %c0_i32 = arith.constant 0 : i32
    %c0_i32_0 = arith.constant 0 : i32
    %c0_i32_1 = arith.constant 0 : i32
    return %c0_i32, %c0_i32_0 : i32, i32
  }
  func.func @transform_6(%arg0: i32, %arg1: i32) -> (i32, i32, i32) {
    %c0_i32 = arith.constant 0 : i32
    %c0_i32_0 = arith.constant 0 : i32
    return %arg0, %c0_i32, %arg1 : i32, i32, i32
  }
}

</mosaic_0001>

<bundles_post_ra>
// kernel: tpu_custom_call.1
= control target key start
LH: loop header
LB: loop body
LE: loop exit
PB: predicated region body
PF: predicated region fallthrough
CT: control target
= control target key end

     0   :  { %11 = vsyncpa [#allocation3], 0  ;;  %s1317_s0 = inlined_call_operand.hbm [shape: f32[2,8,128], index: 0, kind: input, shape index: {}, may-alias: {0,6}]   ;;  %s1318_s1 = inlined_call_operand.vmem [shape: f32[2,1,8,2], index: 1, kind: input, shape index: {}]   ;;  %s1319_s2 = inlined_call_operand.vmem [shape: f32[3,16,8], index: 2, kind: input, shape index: {}]   ;;  %s1320_s3 = inlined_call_operand.vmem [shape: f32[16,1], index: 3, kind: input, shape index: {}]   ;;  %s1321_s4 = inlined_call_operand.vmem [shape: f32[8,8], index: 4, kind: input, shape index: {}]   ;;  %s1322_s5 = inlined_call_operand.vmem [shape: f32[8,1], index: 5, kind: input, shape index: {}]   ;;  %s1323_s6 = inlined_call_operand.hbm [shape: f32[2,8,128], index: 6, kind: output, shape index: {}, may-alias: {0,6}]  }
   0x1   :  { %13 = vsyncpa [#allocation3 + $0x1], 0 }
   0x2   :  { %14 = vsyncpa [#allocation4], 0 }
   0x3   :  { %16 = vsyncpa [#allocation4 + $0x1], 0  ;;  %s1092_s21 = smov 0   ;;  %s1094_s22 = smov 0  }
   0x4   :  { %s1096_s23 = smov 0   ;;  %s1098_s24 = smov 0  }
   0x5   :  { %s1100_s25 = smov 0   ;;  %s1102_s26 = smov 0  }
   0x6 LB: > { %s799_s27 = sadd.s32 4294967295, %s1047_s26   ;;  %s800_s28 = sadd.s32 4294967294, %s1047_s26   ;;  %s1047_s26 = sphi %s1102_s26, %s22_s26   ;;  %s1043_s25 = sphi %s1100_s25, %s1339_s25   ;;  %s1039_s24 = sphi %s1098_s24, %s1338_s24   ;;  %s1035_s23 = sphi %s1096_s23, %s1337_s23   ;;  %s1031_s22 = sphi %s1094_s22, %s1336_s22   ;;  %s1027_s21 = sphi %s1092_s21, %s1335_s21  }
   0x7   : > { %s34_s29 = sadd.s32 1, %s1043_s25  ;;  %s43_s30 = sadd.s32 1, %s1035_s23 }
   0x8   : > { %p36_p0 = scmp.ge.s32.totalorder %s34_s29, 2  ;;  %p50_p1 = scmp.ne.s32.totalorder %s1035_s23, %s1031_s22 }
   0x9   : > { %p51_p2 = scmp.eq.s32.totalorder %s1047_s26, 0  ;;  %p56_p3 = scmp.ne.s32.totalorder %s1031_s22, %s1027_s21 }
   0xa   : > { %s1341_s29 = smov (%p36_p0, %s34_s29), 0  ;;  %p57_p5 = scmp.eq.s32.totalorder %s799_s27, 0 }
   0xb   : > { %p1133_p4 = por %p51_p2, %p50_p1  ;;  %s38_s8 = ssub.s32 %s1043_s25, %s1341_s29 }
   0xc   : > { %p194_p6 = scmp.eq.s32.totalorder %s799_s27, 1  ;;  %p41_p7 = scmp.eq.s32.totalorder %s38_s8, 0 }
   0xd   : > { %p1139_p8 = por %p57_p5, %p56_p3  ;;  %p200_p10 = scmp.eq.s32.totalorder %s800_s28, 1 }
   0xe   : > { %p1143_p9 = por %p194_p6, %p50_p1  ;;  %p871_p13 = scmp.lt.s32.totalorder %s1047_s26, 2 }
   0xf   : > { %s1148_s11 = scalar_select %p41_p7, %s1035_s23, %s43_s30  }
  0x10   : > { %s1327_s10 = scalar_select %p1143_p9, 1, 0 }
  0x11   : > { %p1150_p11 = por %p200_p10, %p56_p3  ;;  %s232_s13 = sand.u32 1, %s1035_s23  }
  0x12   : > { %s803_s14 = sshll.u32 %s232_s13, 3  ;;  %s804_s15 = sshll.u32 %s1043_s25, 7 }
  0x13   : > { %s1328_s12 = scalar_select %p1150_p11, 1, 0 }
  0x14   : > { %s1161_s18 = scalar_lea.hbm %s1317_s0, %s804_s15  ;;  %s236_s19 = scalar_lea.vmem [#allocation2], %s803_s14 }
  0x15   : > { %s244_s20 = sshll.u32 %s236_s19, 4  ;;  %p1167_p0 = pnand %p871_p13, %p1133_p4  ;;  %s1163_s20 = int_to_ptr.vmem [resolvable:$true] %s244_s20 }
  0x16   : > { %s233_s28 = scalar_lea.sflag [#allocation3], %s232_s13  ;;  %s935_s30 = scalar_lea.hbm %s1161_s18, 128 }
  0x17   : > { %p936_p3 = scmp.ne.s32.totalorder %s1161_s18, %s935_s30  ;;  %p937_p5 = pneg %p1167_p0 }
  0x18   : > { %s940_s7 = scalar_lea.hbm %s1317_s0, 256  ;;  %p941_p4 = scmp.lt.u32.totalorder %s1161_s18, %s1317_s0 }
  0x19   : > { %p938_p6 = pnand %p937_p5, %p936_p3  ;;  %p942_p10 = scmp.lt.u32.totalorder %s940_s7, %s935_s30 }
  0x1a   : > { %p944_p12 = scmp.lt.u32.totalorder %s935_s30, %s1161_s18 }
  0x1b   : > { %p939_p7 = pneg %p938_p6  ;;  %p943_p13 = por %p942_p10, %p941_p4 }
  0x1d   : > { %p945_p1 = por %p944_p12, %p943_p13 }
  0x1f   : > { %p946_p2 = pnand %p945_p1, %p939_p7 }
  0x21   : > { %949 = shalt.err (!%p946_p2)
}
  0x22   : > { %s950_s13 = scalar_lea.vmem %s1163_s20, 128  ;;  %s1049_s17 = smov [#allocation2]  }
  0x23   : > { %p951_p3 = scmp.ne.s32.totalorder %s1163_s20, %s950_s13  ;;  %s955_s19 = sshll.u32 %s1049_s17, 4  ;;  %s956_s19 = int_to_ptr.vmem [resolvable:$false] %s955_s19 }
  0x24   : > { %s957_s8 = scalar_lea.vmem %s956_s19, 256  ;;  %p958_p9 = scmp.lt.s32.totalorder %s1163_s20, %s956_s19 }
  0x25   : > { %p953_p6 = pnand %p951_p3, %p937_p5  ;;  %p959_p4 = scmp.lt.s32.totalorder %s957_s8, %s950_s13 }
  0x27   : > { %p954_p11 = pneg %p953_p6  ;;  %p960_p10 = por %p959_p4, %p958_p9 }
  0x29   : > { %p961_p12 = pnand %p960_p10, %p954_p11 }
  0x2b   : > { %964 = shalt.err (!%p961_p12)
}
  0x2c   : > { %866 = dma.hbm_to_vmem [thread:$0]  (!%p1167_p0), %s1161_s18, 128, %s1163_s20, %s233_s28  }
  0x2d   : > { %p1330_p1 = scmp.lt.s32.totalorder %s1047_s26, 3  ;;  %p1331_p2 = scmp.ge.s32.totalorder %s1047_s26, 1 }
  0x2f   : > { %p260_p5 = pnand %p1331_p2, %p1330_p1 }
  0x30   : > { %s1203_s30 = sand.u32 (!%p260_p5), 1, %s1031_s22  }
  0x31   : > { %263 = sbr.rel (%p260_p5) target bundleno = 666 (0x29a), region = 44  ;;  %s806_s14 = sshll.u32 (!%p260_p5), %s1203_s30, 3 }
  0x32   : > { %s266_s7 = scalar_lea.sflag (!%p260_p5), [#allocation3], %s1203_s30  ;;  %s269_s27 = scalar_lea.vmem (!%p260_p5), [#allocation2], %s806_s14 }
  0x38   : > { %1018 = dma.done.wait (%p1139_p8), %s266_s7, 128  }
  0x39   : > { %1020 = vsyncadd (%p1139_p8), %s266_s7, 4294967168  ;;  %p305_p9 = scmp.lt.s32.totalorder %s1039_s24, 1  ;;  %v1050_v0 = vmov 0   ;;  %vm338_vm0 = vcmask 64512   ;;  %v1218_v2 = vld [vmem:[%s269_s27] sm:$0xff]  ;;  %v809_v3 = vld [vmem:[%s1319_s2 + $0x10] sm:$0xff]  ;;  %v314_v11 = vlaneseq }
  0x3a   : > { %927 = vset.pattern.permute.xlu0 %v1050_v0  ;;  %929 = vset.pattern.permute.xlu1 %v1050_v0  ;;  %s1051_s9 = smov 1   ;;  %v810_v4 = vld [vmem:[%s1319_s2 + $0x18] sm:$0xff]  ;;  %v1052_v5 = vmov 1   ;;  %s1053_s7 = smov 127   ;;  %v336_v6 = vld [vmem:[%s1319_s2] sm:$0xff]  ;;  %v588_v8 = vld [vmem:[%s1320_s3 + $0x8] sm:$0xff] }
  0x3b   : > { %s306_s18 = scalar_select %p305_p9, %s1039_s24, 1  ;;  %317 = vrot.lane.b32.xlu1 %v1218_v2, %s1051_s9  ;;  %840 = vmatprep.subr.mxu0 %v1218_v2  ;;  %v815_v7 = vld [vmem:[%s1319_s2 + $0x20] sm:$0xff]  ;;  %v315_v12 = vand.u32 127, %v314_v11  ;;  %v337_v16 = vld [vmem:[%s1319_s2 + $0x8] sm:$0xff]  ;;  %v1054_v21 = vmov 0.0   ;;  %vm1055_vm3 = vmmov 0  }
  0x3c   : > { %842 = vmatprep.mubr.msk.f32.mxu0 %vm338_vm0, %v809_v3  ;;  %841 = vmatpush3.msra.mxu0 %v1218_v2  ;;  %v587_v9 = vld [vmem:[%s1320_s3] sm:$0xff]  ;;  %v816_v20 = vld [vmem:[%s1319_s2 + $0x28] sm:$0xff]  ;;  %s821_s15 = sshll.u32 %s1039_s24, 7  ;;  %s690_s8 = scalar_lea.sflag [#allocation4], %s1203_s30 }
  0x3d   : > { %s808_s20 = sshll.u32 %s306_s18, 3  ;;  %843 = vmatmul.mubr.msk.f32.vlgmr.msra.gmra.mrb[0].mxu0 %vm338_vm0, %v810_v4  ;;  %837 = vmatprep.mubr.msk.f32.mxu1 %vm338_vm0, %v336_v6  ;;  %v608_v10 = vld [vmem:[%s1322_s5] sm:$0xff]  ;;  %vm316_vm1 = vcmp.eq.s32.totalorder %v315_v12, 0  ;;  %vm325_vm2 = vcmp.eq.s32.totalorder %v315_v12, 127  ;;  %s1268_s19 = scalar_lea.hbm %s1323_s6, %s821_s15 }
  0x3e   : > { %s311_s16 = scalar_lea.vmem %s1318_s1, %s808_s20  ;;  %847 = vmatprep.mubr.msk.f32.mxu0 %vm338_vm0, %v815_v7  ;;  %v607_v38 = vld [vmem:[%s1321_s4] sm:$0xff]  ;;  %p1332_p11 = scmp.ne.s32.totalorder %s1327_s10, 0 }
  0x3f   : > { %v313_v1 = vld [vmem:[%s311_s16] sm:$0xff]  ;;  %326 = vrot.lane.b32.xlu1 %v1218_v2, %s1053_s7  ;;  %s304_s16 = scalar_lea.vmem [#allocation5], %s806_s14  ;;  %s1056_s14 = smov [#allocation5]  }
  0x40   : > { %321 = vperm.xlu0 %927, %v313_v1   ;;  %s704_s13 = sshll.u32 %s304_s16, 4  ;;  %s969_s7 = sshll.u32 %s1056_s14, 4  ;;  %s1270_s13 = int_to_ptr.vmem [resolvable:$true] %s704_s13  ;;  %s970_s7 = int_to_ptr.vmem [resolvable:$false] %s969_s7 }
  0x41   : > { %s965_s24 = scalar_lea.vmem %s1270_s13, 128  ;;  %s971_s27 = scalar_lea.vmem %s970_s7, 256 }
  0x42   : > { %p966_p8 = scmp.ne.s32.totalorder %s1270_s13, %s965_s24  ;;  %p972_p13 = scmp.lt.s32.totalorder %s1270_s13, %s970_s7 }
  0x43   : > { %596 = vperm.xlu1 %929, %v588_v8   ;;  %p973_p3 = scmp.lt.s32.totalorder %s971_s27, %s965_s24 }
  0x44   : > { %928 = vset.pattern.permute.xlu0 %v1052_v5  ;;  %p967_p0 = pnand %p966_p8, %p1332_p11 }
  0x45   : > { %329 = vperm.xlu0 %928, %v313_v1   ;;  %p974_p6 = por %p973_p3, %p972_p13 }
  0x46   : > { %p968_p7 = pneg %p967_p0 }
  0x47   : > { %611 = vperm.xlu1 %929, %v608_v10  }
  0x48   : > { %p975_p4 = pnand %p974_p6, %p968_p7 }
  0x49   : > { %930 = vset.pattern.permute.xlu0 %v1050_v0 }
  0x4a   : > { %591 = vperm.xlu0 %930, %v587_v9  }
  0xad   : > { %v318_v13 = vpop.permute.xlu1 %317 }
  0xb1   : > { %v327_v17 = vpop.permute.xlu1 %326 }
  0xbf   : > { %v322_v14 = vpop.permute.xlu0 %321 }
  0xc0   : > { %v324_v15 = vsel %vm316_vm1, %v322_v14, %v318_v13 }
  0xc1   : > { %835 = vmatprep.subr.mxu1 %v324_v15 }
  0xc2   : > { %836 = vmatpush3.msra.mxu1 %v324_v15  ;;  %v597_v28 = vpop.permute.xlu1 %596 }
  0xc3   : > { %838 = vmatmul.mubr.msk.f32.vlgmr.msra.gmra.mrb[0].mxu1 %vm338_vm0, %v337_v16  ;;  %850 = vmatprep.subr.mxu1 %v1054_v21 }
  0xc4   : > { %v330_v18 = vpop.permute.xlu0 %329  ;;  %852 = vmatprep.mubr.msk.f32.mxu1 %vm1055_vm3, %v1054_v21 }
  0xc5   : > { %v332_v19 = vsel %vm325_vm2, %v330_v18, %v327_v17 }
  0xc6   : > { %845 = vmatprep.subr.mxu0 %v332_v19  ;;  %v612_v39 = vpop.permute.xlu1 %611 }
  0xc7   : > { %846 = vmatpush3.msra.mxu0 %v332_v19 }
  0xc8   : > { %848 = vmatmul.mubr.msk.f32.vlgmr.msra.gmra.mrb[0].mxu0 %vm338_vm0, %v816_v20 }
  0xc9   : > { %v592_v30 = vpop.permute.xlu0 %591 }
 0x196   : > { %v839_v22 = vpop.f32.mrb[0].mxu1 }
 0x197   : > { %v411_v23 = vpop.f32.mrb[1].mxu1 }
 0x19b   : > { %v849_v24 = vpop.f32.mrb[0].mxu0 }
 0x19c   : > { %v855_v25 = vadd.f32 %v849_v24, %v839_v22  ;;  %v576_v26 = vpop.f32.mrb[1].mxu0 }
 0x19d   : > { %v856_v27 = vadd.f32 %v576_v26, %v411_v23 }
 0x19e   : > { %v600_v29 = vadd.f32 %v855_v25, %v597_v28 }
 0x19f   : > { %v599_v32 = vadd.f32 %v856_v27, %v592_v30 }
 0x1a0   : > { %v602_v31 = vmul.f32 0.5, %v600_v29 }
 0x1a2   : > { %931 = vtanh.f32 %v602_v31 }
 0x1a3   : > { %933 = vtanh.f32 %v599_v32 }
 0x1ac   : > { %v932_v33 = vpop.eup %931 }
 0x1ad   : > { %v604_v34 = vadd.f32 1.0, %v932_v33  ;;  %v934_v36 = vpop.eup %933 }
 0x1af   : > { %v605_v35 = vmul.f32 0.5, %v604_v34 }
 0x1b1   : > { %v606_v37 = vmul.f32 %v934_v36, %v605_v35 }
 0x1b3   : > { %851 = vmatpush3.msra.mxu1 %v606_v37 }
 0x1b4   : > { %853 = vmatmul.mubr.msk.f32.vlgmr.msra.gmra.mrb[2].mxu1 %vm338_vm0, %v607_v38 }
 0x287   : > { %v683_v40 = vpop.f32.mrb[2].mxu1 }
 0x288   : > { %v684_v41 = vadd.f32 %v683_v40, %v612_v39  ;;  %v854_v42 = vpop.f32.mrb[3].mxu1 }
 0x28a   : > { %v687_v43 = vadd.f32 %v684_v41, %v1218_v2 }
 0x28c   : > { %688 = vst [vmem:[%s304_s16] sm:$0xff] %v687_v43 }
 0x28d   : > { %978 = shalt.err (!%p975_p4)
}
 0x28e   : > { %s979_s30 = scalar_lea.hbm %s1268_s19, 128  ;;  %s983_s28 = scalar_lea.hbm %s1323_s6, 256 }
 0x28f   : > { %p980_p10 = scmp.ne.s32.totalorder %s1268_s19, %s979_s30  ;;  %p984_p2 = scmp.lt.u32.totalorder %s1268_s19, %s1323_s6 }
 0x290   : > { %p985_p5 = scmp.lt.u32.totalorder %s983_s28, %s979_s30  ;;  %p987_p8 = scmp.lt.u32.totalorder %s979_s30, %s1268_s19 }
 0x291   : > { %p981_p12 = pnand %p980_p10, %p1332_p11 }
 0x292   : > { %p986_p9 = por %p985_p5, %p984_p2 }
 0x293   : > { %p982_p1 = pneg %p981_p12 }
 0x294   : > { %p988_p0 = por %p987_p8, %p986_p9 }
 0x296   : > { %p989_p7 = pnand %p988_p0, %p982_p1 }
 0x298   : > { %992 = shalt.err (!%p989_p7)
}
 0x299   : > { %861 = dma.vmem_to_hbm [thread:$0]  (%p1332_p11), %s1270_s13, 128, %s1268_s19, %s690_s8  }
 0x29a PF: > { %s716_s17 = sand.u32 1, %s1027_s21   ;;  %p1333_p13 = scmp.ne.s32.totalorder %s1328_s12, 0 }
 0x29b   : > { %p1334_p3 = scmp.ge.s32.totalorder %s1047_s26, 2  ;;  %s717_s9 = scalar_lea.sflag [#allocation4], %s716_s17 }
 0x29d   : > { %p868_p6 = pnand %p1334_p3, %p1333_p13 }
 0x29f   : > { %1022 = dma.done.wait (!%p868_p6), %s717_s9, 128  }
 0x2a0   : > { %1024 = vsyncadd (!%p868_p6), %s717_s9, 4294967168  ;;  %s22_s26 = sadd.s32 1, %s1047_s26   ;;  %s1335_s21 = smov %s1031_s22 }
 0x2a1   : > { %p19_p4 = scmp.ge.s32.totalorder %s22_s26, 4   ;;  %s1336_s22 = smov %s1035_s23 }
 0x2a2   : > { %s1337_s23 = smov %s1148_s11  ;;  %s1338_s24 = smov %s1043_s25 }
 0x2a3   : > { %s1339_s25 = smov %s1341_s29  ;;  %21 = sbr.rel (!%p19_p4) target bundleno = 6 (0x6), region = 94 }
 0x2aa   :  { %722 = vsyncpa [#allocation3], 1 }
 0x2ab   :  { %724 = vsyncpa [#allocation3 + $0x1], 1 }
 0x2ac   :  { %725 = vsyncpa [#allocation4], 1 }
 0x2ad   :  { %727 = vsyncpa [#allocation4 + $0x1], 1 }

</bundles_post_ra>
